<compile_context>
chip_gen: v7x
topology: tpu7x:2x2x1
jax: 0.10.0
libtpu: 0.0.40
codegen_flags: <defaults>
</compile_context>

<pallas_src>
import functools

import jax
import jax.numpy as jnp
import numpy as np
from jax.experimental import pallas as pl
from jax.experimental.pallas import tpu as pltpu

LANE = 128


def _round_up(x, m):
    return ((x + m - 1) // m) * m


def _const_spec(arr, n_grid_axes):
    """Full-array block, constant index map, SINGLE-buffered.

    Constant-index blocks are DMA'd exactly once per pallas_call; the default
    double buffer is dead VMEM for them.  Buffered(1) frees that VMEM for
    larger row tiles (most important on v7x: 32 MiB scoped of 64 MiB physical).
    """
    nd = arr.ndim
    if n_grid_axes == 1:
        idx = lambda i, _n=nd: (0,) * _n
    else:
        idx = lambda i, j, _n=nd: (0,) * _n
    return pl.BlockSpec(arr.shape, idx, pipeline_mode=pl.Buffered(buffer_count=1))


# ----------------------------------------------------------------------------
# Kernel A: DETR detection head (class_embed Linear + bbox_embed 3-layer MLP)
#   pred_logits = hs @ Wc + bc
#   pred_boxes  = sigmoid(MLP3(hs))
# ----------------------------------------------------------------------------
def pack_detr_head_params(Wc, bc, W1, b1, W2, b2, W3, b3, *, tc=256):
    """Pack/pad the detection-head weights ONCE at parameter-load time.

    [class_embed | bbox layer-1] are fused into one RHS (shared LHS -> one MXU
    stream) and every lane dim is padded to a multiple of `tc` (the column
    chunk width, a multiple of 128) so the kernel can stream weight chunks and
    overlap their DMA with compute.
    """
    f32 = jnp.float32
    D, C1 = Wc.shape
    H = W1.shape[1]            # bbox MLP hidden dim (== D in DETR)
    BOX = W3.shape[1]          # 4
    tc = max(LANE, _round_up(tc, LANE))
    C1_pad = _round_up(C1, tc)
    H_pad = _round_up(H, tc)
    BOXP = _round_up(BOX, LANE)

    Wcat = jnp.concatenate(
        [jnp.pad(Wc, ((0, 0), (0, C1_pad - C1))),
         jnp.pad(W1, ((0, 0), (0, H_pad - H)))], axis=1)            # (D, C1_pad+H_pad)
    bcat = jnp.concatenate(
        [jnp.pad(bc.astype(f32), ((0, 0), (0, C1_pad - C1))),
         jnp.pad(b1.astype(f32), ((0, 0), (0, H_pad - H)))], axis=1)
    W2p = jnp.pad(W2, ((0, H_pad - H), (0, 0)))   # zero rows: padded h lanes are 0
    b2f = b2.astype(f32)
    W3p = jnp.pad(W3, ((0, 0), (0, BOXP - BOX)))
    b3p = jnp.pad(b3.astype(f32), ((0, 0), (0, BOXP - BOX)))

    return dict(Wcat=Wcat, bcat=bcat, W2p=W2p, b2f=b2f, W3p=W3p, b3p=b3p,
                tc=tc, n_lc=C1_pad // tc, n_col=(C1_pad + H_pad) // tc,
                D=D, C1=C1, C1_pad=C1_pad, BOX=BOX, BOXP=BOXP)


def _detr_head_kernel(n_lc, n_col, x_ref, wcat_ref, bcat_ref, w2_ref, b2_ref,
                      w3_ref, b3_ref, logits_ref, boxes_ref, acc2_ref):
    j = pl.program_id(1)
    x = x_ref[...]                                              # (tm, D), bf16
    # One MXU pass per tc-wide column chunk of the fused [Wc | W1] weight; the
    # next chunk's weight DMA overlaps this chunk's matmul (key in the
    # single-row-tile / small-M regime where the head is weight-DMA bound).
    chunk = jnp.dot(x, wcat_ref[...],
                    preferred_element_type=jnp.float32) + bcat_ref[...]

    @pl.when(j < n_lc)                   # class_embed columns -> logits output
    def _():
        logits_ref[...] = chunk

    @pl.when(j == n_lc)                  # first bbox layer-1 chunk: init accumulator
    def _():
        acc2_ref[...] = jnp.zeros_like(acc2_ref)

    @pl.when(j >= n_lc)                  # bbox layer-1 chunk -> layer-2 partial sum
    def _():
        h1 = jnp.maximum(chunk, 0.0).astype(x.dtype)
        acc2_ref[...] += jnp.dot(h1, w2_ref[...],
                                 preferred_element_type=jnp.float32)

    @pl.when(j == n_col - 1)             # finalize: layer-2 ReLU, layer-3, sigmoid
    def _():
        h2 = jnp.maximum(acc2_ref[...] + b2_ref[...], 0.0).astype(x.dtype)
        boxes_ref[...] = jax.nn.sigmoid(
            jnp.dot(h2, w3_ref[...], preferred_element_type=jnp.float32)
            + b3_ref[...]).astype(boxes_ref.dtype)


def detr_head(hs, params, *, tm=512):
    """hs: (B, Q, D) decoder output.  params: pack_detr_head_params() result.
    Returns f32 (B, Q, C1) logits and bf16 (B, Q, 4) sigmoid boxes."""
    B, Q, D = hs.shape
    assert D == params["D"]
    tc, n_lc, n_col = params["tc"], params["n_lc"], params["n_col"]
    C1, C1_pad = params["C1"], params["C1_pad"]
    BOX, BOXP = params["BOX"], params["BOXP"]
    Wcat, bcat = params["Wcat"], params["bcat"]
    W2p, b2f, W3p, b3p = params["W2p"], params["b2f"], params["W3p"], params["b3p"]
    D2 = W2p.shape[1]
    f32 = jnp.float32

    # Collapse batch into the matmul M dim.  Snap the row tile to a multiple
    # of 256 (full 256-wide v6e/v7x MXU) when M is large; single padded tile
    # (multiple of 8 sublanes) when M is small.
    M = B * Q
    if M < 256:
        tm = _round_up(M, 8)
    else:
        tm = max(256, min(tm // 256, M // 256) * 256)
    M_pad = _round_up(M, tm)
    x2d = hs.reshape(M, D)
    if M_pad != M:
        x2d = jnp.pad(x2d, ((0, M_pad - M), (0, 0)))

    grid = (M_pad // tm, n_col)

    in_specs = [
        pl.BlockSpec((tm, D), lambda i, j: (i, 0)),        # x: fetched once per row tile
        pl.BlockSpec((D, tc), lambda i, j: (0, j)),        # fused [Wc|W1] column chunk (streamed)
        pl.BlockSpec((1, tc), lambda i, j: (0, j)),        # fused bias chunk
        # W2 row chunk matching the current layer-1 column chunk (streamed);
        # clamped to chunk 0 while the class_embed columns are in flight so it
        # prefetches ahead of its first use.
        pl.BlockSpec((tc, D2), lambda i, j: (jnp.maximum(j - n_lc, 0), 0)),
        _const_spec(b2f, 2), _const_spec(W3p, 2), _const_spec(b3p, 2),
    ]
    out_specs = (
        # After the class columns are done, the index stays clamped on the last
        # logits block (kept resident, written back when the row tile changes).
        pl.BlockSpec((tm, tc), lambda i, j: (i, jnp.minimum(j, n_lc - 1))),
        pl.BlockSpec((tm, BOXP), lambda i, j: (i, 0)),
    )

    nbytes = lambda a: int(a.size) * a.dtype.itemsize
    flops = (2 * M_pad * D * (Wcat.shape[1]) + 2 * M_pad * W2p.shape[0] * D2
             + 2 * M_pad * D2 * BOXP)
    bytes_accessed = (nbytes(x2d) + nbytes(Wcat) + nbytes(bcat) + nbytes(W2p)
                      + nbytes(b2f) + nbytes(W3p) + nbytes(b3p)
                      + M_pad * C1_pad * 4 + M_pad * BOXP * 2)

    logits_pad, boxes_pad = pl.pallas_call(
        functools.partial(_detr_head_kernel, n_lc, n_col),
        out_shape=(
            jax.ShapeDtypeStruct((M_pad, C1_pad), f32),
            jax.ShapeDtypeStruct((M_pad, BOXP), hs.dtype),   # bf16 boxes writeback
        ),
        grid=grid,
        in_specs=in_specs,
        out_specs=out_specs,
        scratch_shapes=[pltpu.VMEM((tm, D2), f32)],          # layer-2 accumulator
        compiler_params=pltpu.CompilerParams(
            # Row axis "arbitrary": the head is weight-DMA bound, and a
            # "parallel" split on v7x's 2 TensorCores would make each core DMA
            # the full weight set (2x the dominant cost).
            dimension_semantics=("arbitrary", "arbitrary"),
            vmem_limit_bytes=32 * 1024 * 1024),              # fits v7x scoped cap
        cost_estimate=pl.CostEstimate(
            flops=flops, transcendentals=M_pad * BOXP,
            bytes_accessed=bytes_accessed),
    )(x2d, Wcat, bcat, W2p, b2f, W3p, b3p)

    logits = logits_pad[:M, :C1].reshape(B, Q, C1)
    boxes = boxes_pad[:M, :BOX].reshape(B, Q, BOX)
    return logits, boxes


def detr_head_ref(hs, Wc, bc, W1, b1, W2, b2, W3, b3):
    f32 = jnp.float32
    logits = jnp.dot(hs, Wc, preferred_element_type=f32) + bc
    h = jax.nn.relu(jnp.dot(hs, W1, preferred_element_type=f32) + b1)
    h = jax.nn.relu(
        jnp.dot(h.astype(W2.dtype), W2, preferred_element_type=f32) + b2)
    boxes = jax.nn.sigmoid(
        jnp.dot(h.astype(W3.dtype), W3, preferred_element_type=f32) + b3)
    return logits, boxes


# ----------------------------------------------------------------------------
# Kernel B: UPT ROI / logit head (compute_roi_embeddings())
#   m = adapter(x); u = a*m + (1-a)*x; u /= ||u||; out = exp(s) * (u @ Wp + bp)
# ----------------------------------------------------------------------------
def pack_roi_head_params(alpha1, logit_scale, W1, b1, W2, b2, Wp, bp):
    """Pack the ROI/adapter head params once at load time: pad the projection
    to a lane-dense width, cast biases to f32, and hoist the scalar math
    (exp(logit_scale), 1 - alpha1) out of the kernel."""
    f32 = jnp.float32
    D, D_h = W1.shape
    C = Wp.shape[1]
    C_pad = _round_up(C, LANE)
    Wpp = jnp.pad(Wp, ((0, 0), (0, C_pad - C)))
    bpp = jnp.pad(bp.astype(f32), ((0, 0), (0, C_pad - C)))
    a = jnp.asarray(alpha1, f32).reshape(())
    ls = jnp.asarray(logit_scale, f32).reshape(())
    scalars = jnp.stack([a, 1.0 - a, jnp.exp(ls)]).astype(f32)   # SMEM (3,)
    return dict(scalars=scalars, W1=W1, b1f=b1.astype(f32), W2=W2,
                b2f=b2.astype(f32), Wpp=Wpp, bpp=bpp,
                D=D, D_h=D_h, C=C, C_pad=C_pad)


def _roi_head_kernel(sc_ref, x_ref, w1_ref, b1_ref, w2_ref, b2_ref,
                     wp_ref, bp_ref, out_ref):
    x = x_ref[...]                                              # (tn, D), bf16
    # adapter = MLP(D, D//2, D, 2): ReLU after first layer, linear second.
    h = jnp.maximum(
        jnp.dot(x, w1_ref[...], preferred_element_type=jnp.float32) + b1_ref[...],
        0.0).astype(x.dtype)
    m = jnp.dot(h, w2_ref[...], preferred_element_type=jnp.float32) + b2_ref[...]
    a = sc_ref[0]
    one_minus_a = sc_ref[1]
    scale = sc_ref[2]                                           # exp(logit_scale)
    u = a * m + one_minus_a * x.astype(jnp.float32)
    inv = jax.lax.rsqrt(jnp.sum(u * u, axis=-1, keepdims=True))
    u = (u * inv).astype(x.dtype)
    out_ref[...] = scale * (
        jnp.dot(u, wp_ref[...], preferred_element_type=jnp.float32) + bp_ref[...])


def roi_head(x, params, *, tn=256):
    """x: (N, D) union ROI features.  params: pack_roi_head_params() result.
    Returns f32 (N, C) action logits.  tn=256 fills the 256-wide v6e/v7x MXU;
    pass tn=128 on v5e."""
    N, D = x.shape
    assert D == params["D"]
    C, C_pad, D_h = params["C"], params["C_pad"], params["D_h"]
    W1, b1f, W2, b2f = params["W1"], params["b1f"], params["W2"], params["b2f"]
    Wpp, bpp, scalars = params["Wpp"], params["bpp"], params["scalars"]
    f32 = jnp.float32

    if N < tn:
        tn = _round_up(N, 8)
    else:
        tn = max(8, (tn // 8) * 8)
    N_pad = _round_up(N, tn)
    xp = x
    if N_pad != N:
        # Pad rows with ones (not zeros) so the L2 norm of padded rows stays
        # finite -> no inf/NaN in the discarded tail.
        xp = jnp.pad(x, ((0, N_pad - N), (0, 0)), constant_values=1)

    grid = (N_pad // tn,)
    smem = pl.BlockSpec(memory_space=pltpu.MemorySpace.SMEM)

    nbytes = lambda a: int(a.size) * a.dtype.itemsize
    flops = 2 * N_pad * (D * D_h + D_h * D + D * C_pad)
    bytes_accessed = (nbytes(xp) + nbytes(W1) + nbytes(b1f) + nbytes(W2)
                      + nbytes(b2f) + nbytes(Wpp) + nbytes(bpp) + N_pad * C_pad * 4)

    out_pad = pl.pallas_call(
        _roi_head_kernel,
        out_shape=jax.ShapeDtypeStruct((N_pad, C_pad), f32),
        grid=grid,
        in_specs=[
            smem,                                              # [alpha, 1-alpha, exp(s)]
            pl.BlockSpec((tn, D), lambda i: (i, 0)),
            _const_spec(W1, 1), _const_spec(b1f, 1), _const_spec(W2, 1),
            _const_spec(b2f, 1), _const_spec(Wpp, 1), _const_spec(bpp, 1),
        ],
        out_specs=pl.BlockSpec((tn, C_pad), lambda i: (i, 0)),
        compiler_params=pltpu.CompilerParams(
            dimension_semantics=("arbitrary",),
            vmem_limit_bytes=32 * 1024 * 1024),
        cost_estimate=pl.CostEstimate(
            flops=flops, transcendentals=2 * N_pad,
            bytes_accessed=bytes_accessed),
    )(scalars, xp, W1, b1f, W2, b2f, Wpp, bpp)

    return out_pad[:N, :C]


def roi_head_ref(alpha1, logit_scale, x, W1, b1, W2, b2, Wp, bp):
    f32 = jnp.float32
    a = jnp.asarray(alpha1, f32).reshape(())
    h = jax.nn.relu(jnp.dot(x, W1, preferred_element_type=f32) + b1)
    m = jnp.dot(h.astype(W2.dtype), W2, preferred_element_type=f32) + b2
    u = a * m + (1.0 - a) * x.astype(f32)
    u = u / jnp.linalg.norm(u, axis=-1, keepdims=True)
    return jnp.exp(jnp.asarray(logit_scale, f32)) * (
        jnp.dot(u.astype(Wp.dtype), Wp, preferred_element_type=f32) + bp)


# ----------------------------------------------------------------------------
if __name__ == "__main__":
    key = jax.random.PRNGKey(0)
    ks = jax.random.split(key, 20)

    # Small shapes consistent with the module (scaled down from D=1024, Q=100,
    # C_ACT=600).  Q/N chosen so row padding + output slicing is exercised.
    B, Q, D = 2, 10, 32
    C_OBJ1 = 17                 # num object classes + 1 (class_embed output)
    N_PAIR = 12                 # human-object pairs per image
    D_HID = D // 2              # adapter hidden
    C_ACT = 32                  # num action classes

    bf16 = jnp.bfloat16
    f32 = jnp.float32
    s = 0.1

    # Activations + weights in bf16 (f32 MXU accumulation in-kernel);
    # biases / scalars stay f32.
    hs = jax.random.normal(ks[0], (B, Q, D), f32).astype(bf16)
    union_feat = jax.random.normal(ks[1], (N_PAIR, D), f32).astype(bf16)

    Wc = (s * jax.random.normal(ks[2], (D, C_OBJ1), f32)).astype(bf16)
    bc = s * jax.random.normal(ks[3], (1, C_OBJ1), f32)
    W1 = (s * jax.random.normal(ks[4], (D, D), f32)).astype(bf16)
    b1 = s * jax.random.normal(ks[5], (1, D), f32)
    W2 = (s * jax.random.normal(ks[6], (D, D), f32)).astype(bf16)
    b2 = s * jax.random.normal(ks[7], (1, D), f32)
    W3 = (s * jax.random.normal(ks[8], (D, 4), f32)).astype(bf16)
    b3 = s * jax.random.normal(ks[9], (1, 4), f32)

    A1 = (s * jax.random.normal(ks[10], (D, D_HID), f32)).astype(bf16)
    ab1 = s * jax.random.normal(ks[11], (1, D_HID), f32)
    A2 = (s * jax.random.normal(ks[12], (D_HID, D), f32)).astype(bf16)
    ab2 = s * jax.random.normal(ks[13], (1, D), f32)
    Wp = (s * jax.random.normal(ks[14], (D, C_ACT), f32)).astype(bf16)
    bp = s * jax.random.normal(ks[15], (1, C_ACT), f32)

    alpha1 = jnp.full((), 0.1, f32)                       # nn.Parameter(0.1)
    logit_scale = jnp.full((), np.log(1.0 / 0.07), f32)   # nn.Parameter(log(1/0.07))

    # Parameter-load-time packing (done ONCE, not on the per-step critical path).
    detr_params = pack_detr_head_params(Wc, bc, W1, b1, W2, b2, W3, b3, tc=256)
    roi_params = pack_roi_head_params(alpha1, logit_scale, A1, ab1, A2, ab2, Wp, bp)

    # --- run kernels ---
    pred_logits, pred_boxes = detr_head(hs, detr_params)
    roi_logits = roi_head(union_feat, roi_params)
    jax.block_until_ready((pred_logits, pred_boxes, roi_logits))

    # --- verify against pure-JAX references (same bf16 operand precision) ---
    ref_logits, ref_boxes = detr_head_ref(hs, Wc, bc, W1, b1, W2, b2, W3, b3)
    ref_roi = roi_head_ref(alpha1, logit_scale, union_feat, A1, ab1, A2, ab2, Wp, bp)
    np.testing.assert_allclose(np.asarray(pred_logits), np.asarray(ref_logits),
                               rtol=2e-3, atol=2e-3)
    np.testing.assert_allclose(np.asarray(pred_boxes, dtype=np.float32),
                               np.asarray(ref_boxes), rtol=1e-2, atol=1e-2)
    np.testing.assert_allclose(np.asarray(roi_logits), np.asarray(ref_roi),
                               rtol=5e-3, atol=5e-3)

    print("KERNEL_OK")
</pallas_src>

<mosaic_0001>
module attributes {stable_mosaic.version = 11 : i64} {
  func.func @_detr_head_kernel(%arg0: i32, %arg1: i32, %arg2: memref<24x32xbf16, #tpu.memory_space<vmem>>, %arg3: memref<32x256xbf16, #tpu.memory_space<vmem>>, %arg4: memref<1x256xf32, #tpu.memory_space<vmem>>, %arg5: memref<256x32xbf16, #tpu.memory_space<vmem>>, %arg6: memref<1x32xf32, #tpu.memory_space<vmem>>, %arg7: memref<32x128xbf16, #tpu.memory_space<vmem>>, %arg8: memref<1x128xf32, #tpu.memory_space<vmem>>, %arg9: memref<24x256xf32, #tpu.memory_space<vmem>>, %arg10: memref<24x128xbf16, #tpu.memory_space<vmem>>, %arg11: memref<24x32xf32, #tpu.memory_space<vmem>>) attributes {dimension_semantics = [#tpu.dimension_semantics<arbitrary>, #tpu.dimension_semantics<arbitrary>], iteration_bounds = array<i64: 1, 2>, scalar_prefetch = 0 : i64, scratch_operands = 1 : i64, tpu.core_type = #tpu.core_type<tc>, window_params = [{transform_indices = @transform_0, window_bounds = array<i64: 24, 32>}, {transform_indices = @transform_1, window_bounds = array<i64: 32, 256>}, {transform_indices = @transform_2, window_bounds = array<i64: 1, 256>}, {transform_indices = @transform_3, window_bounds = array<i64: 256, 32>}, {pipeline_mode = #tpu.pipeline_mode<synchronous>, transform_indices = @transform_4, window_bounds = array<i64: 1, 32>}, {pipeline_mode = #tpu.pipeline_mode<synchronous>, transform_indices = @transform_5, window_bounds = array<i64: 32, 128>}, {pipeline_mode = #tpu.pipeline_mode<synchronous>, transform_indices = @transform_6, window_bounds = array<i64: 1, 128>}, {transform_indices = @transform_7, window_bounds = array<i64: 24, 256>}, {transform_indices = @transform_8, window_bounds = array<i64: 24, 128>}]} {
    %c0 = arith.constant 0 : index
    %c0_0 = arith.constant 0 : index
    %0 = vector.load %arg2[%c0, %c0_0] : memref<24x32xbf16, #tpu.memory_space<vmem>>, vector<24x32xbf16>
    %c0_1 = arith.constant 0 : index
    %c0_2 = arith.constant 0 : index
    %1 = vector.load %arg3[%c0_1, %c0_2] : memref<32x256xbf16, #tpu.memory_space<vmem>>, vector<32x256xbf16>
    %cst = arith.constant dense<0.000000e+00> : vector<24x256xf32>
    %2 = tpu.matmul %0, %1, %cst {dimension_numbers = #tpu.dot_dimension_numbers<[1], [0], [0], [1], [0, 0, 1, 1], [], []>} : vector<24x32xbf16>, vector<32x256xbf16>, vector<24x256xf32> -> vector<24x256xf32>
    %c0_3 = arith.constant 0 : index
    %c0_4 = arith.constant 0 : index
    %3 = vector.load %arg4[%c0_3, %c0_4] : memref<1x256xf32, #tpu.memory_space<vmem>>, vector<1x256xf32>
    %4 = vector.broadcast %3 : vector<1x256xf32> to vector<24x256xf32>
    %5 = arith.addf %2, %4 : vector<24x256xf32>
    %c1_i32 = arith.constant 1 : i32
    %6 = arith.cmpi slt, %arg1, %c1_i32 : i32
    %7 = arith.extui %6 : i1 to i32
    %c0_i32 = arith.constant 0 : i32
    %8 = arith.cmpi ne, %7, %c0_i32 : i32
    scf.if %8 {
      %c0_11 = arith.constant 0 : index
      %c0_12 = arith.constant 0 : index
      %18 = vector.load %arg9[%c0_11, %c0_12] : memref<24x256xf32, #tpu.memory_space<vmem>>, vector<24x256xf32>
      tpu.vector_store %arg9[%c0_11, %c0_12], %5 {strides = array<i32>} : memref<24x256xf32, #tpu.memory_space<vmem>>, vector<24x256xf32>,
    } else {
    }
    %c1_i32_5 = arith.constant 1 : i32
    %9 = arith.cmpi eq, %arg1, %c1_i32_5 : i32
    %10 = arith.extui %9 : i1 to i32
    %c0_i32_6 = arith.constant 0 : i32
    %11 = arith.cmpi ne, %10, %c0_i32_6 : i32
    scf.if %11 {
      %cst_11 = arith.constant 0.000000e+00 : f32
      %18 = vector.broadcast %cst_11 : f32 to vector<24x32xf32>
      %c0_12 = arith.constant 0 : index
      %c0_13 = arith.constant 0 : index
      %19 = vector.load %arg11[%c0_12, %c0_13] : memref<24x32xf32, #tpu.memory_space<vmem>>, vector<24x32xf32>
      tpu.vector_store %arg11[%c0_12, %c0_13], %18 {strides = array<i32>} : memref<24x32xf32, #tpu.memory_space<vmem>>, vector<24x32xf32>,
    } else {
    }
    %c1_i32_7 = arith.constant 1 : i32
    %12 = arith.cmpi sge, %arg1, %c1_i32_7 : i32
    %13 = arith.extui %12 : i1 to i32
    %c0_i32_8 = arith.constant 0 : i32
    %14 = arith.cmpi ne, %13, %c0_i32_8 : i32
    scf.if %14 {
      %cst_11 = arith.constant 0.000000e+00 : f32
      %18 = vector.broadcast %cst_11 : f32 to vector<24x256xf32>
      %19 = arith.maximumf %5, %18 : vector<24x256xf32>
      %20 = arith.truncf %19 : vector<24x256xf32> to vector<24x256xbf16>
      %c0_12 = arith.constant 0 : index
      %c0_13 = arith.constant 0 : index
      %21 = vector.load %arg11[%c0_12, %c0_13] : memref<24x32xf32, #tpu.memory_space<vmem>>, vector<24x32xf32>
      %c0_14 = arith.constant 0 : index
      %c0_15 = arith.constant 0 : index
      %22 = vector.load %arg5[%c0_14, %c0_15] : memref<256x32xbf16, #tpu.memory_space<vmem>>, vector<256x32xbf16>
      %cst_16 = arith.constant dense<0.000000e+00> : vector<24x32xf32>
      %23 = tpu.matmul %20, %22, %cst_16 {dimension_numbers = #tpu.dot_dimension_numbers<[1], [0], [0], [1], [0, 0, 1, 1], [], []>} : vector<24x256xbf16>, vector<256x32xbf16>, vector<24x32xf32> -> vector<24x32xf32>
      %24 = arith.addf %21, %23 : vector<24x32xf32>
      %c0_17 = arith.constant 0 : index
      %c0_18 = arith.constant 0 : index
      %25 = vector.load %arg11[%c0_17, %c0_18] : memref<24x32xf32, #tpu.memory_space<vmem>>, vector<24x32xf32>
      tpu.vector_store %arg11[%c0_17, %c0_18], %24 {strides = array<i32>} : memref<24x32xf32, #tpu.memory_space<vmem>>, vector<24x32xf32>,
    } else {
    }
    %c1_i32_9 = arith.constant 1 : i32
    %15 = arith.cmpi eq, %arg1, %c1_i32_9 : i32
    %16 = arith.extui %15 : i1 to i32
    %c0_i32_10 = arith.constant 0 : i32
    %17 = arith.cmpi ne, %16, %c0_i32_10 : i32
    scf.if %17 {
      %c0_11 = arith.constant 0 : index
      %c0_12 = arith.constant 0 : index
      %18 = vector.load %arg11[%c0_11, %c0_12] : memref<24x32xf32, #tpu.memory_space<vmem>>, vector<24x32xf32>
      %c0_13 = arith.constant 0 : index
      %c0_14 = arith.constant 0 : index
      %19 = vector.load %arg6[%c0_13, %c0_14] : memref<1x32xf32, #tpu.memory_space<vmem>>, vector<1x32xf32>
      %20 = vector.broadcast %19 : vector<1x32xf32> to vector<24x32xf32>
      %21 = arith.addf %18, %20 : vector<24x32xf32>
      %cst_15 = arith.constant 0.000000e+00 : f32
      %22 = vector.broadcast %cst_15 : f32 to vector<24x32xf32>
      %23 = arith.maximumf %21, %22 : vector<24x32xf32>
      %24 = arith.truncf %23 : vector<24x32xf32> to vector<24x32xbf16>
      %c0_16 = arith.constant 0 : index
      %c0_17 = arith.constant 0 : index
      %25 = vector.load %arg7[%c0_16, %c0_17] : memref<32x128xbf16, #tpu.memory_space<vmem>>, vector<32x128xbf16>
      %cst_18 = arith.constant dense<0.000000e+00> : vector<24x128xf32>
      %26 = tpu.matmul %24, %25, %cst_18 {dimension_numbers = #tpu.dot_dimension_numbers<[1], [0], [0], [1], [0, 0, 1, 1], [], []>} : vector<24x32xbf16>, vector<32x128xbf16>, vector<24x128xf32> -> vector<24x128xf32>
      %c0_19 = arith.constant 0 : index
      %c0_20 = arith.constant 0 : index
      %27 = vector.load %arg8[%c0_19, %c0_20] : memref<1x128xf32, #tpu.memory_space<vmem>>, vector<1x128xf32>
      %28 = vector.broadcast %27 : vector<1x128xf32> to vector<24x128xf32>
      %29 = arith.addf %26, %28 : vector<24x128xf32>
      %30 = arith.negf %29 : vector<24x128xf32>
      %31 = math.exp %30 : vector<24x128xf32>
      %cst_21 = arith.constant 1.000000e+00 : f32
      %32 = vector.broadcast %cst_21 : f32 to vector<24x128xf32>
      %33 = arith.addf %32, %31 : vector<24x128xf32>
      %34 = arith.divf %32, %33 : vector<24x128xf32>
      %35 = arith.truncf %34 : vector<24x128xf32> to vector<24x128xbf16>
      %c0_22 = arith.constant 0 : index
      %c0_23 = arith.constant 0 : index
      %36 = vector.load %arg10[%c0_22, %c0_23] : memref<24x128xbf16, #tpu.memory_space<vmem>>, vector<24x128xbf16>
      tpu.vector_store %arg10[%c0_22, %c0_23], %35 {strides = array<i32>} : memref<24x128xbf16, #tpu.memory_space<vmem>>, vector<24x128xbf16>,
    } else {
    }
    return
  }
  func.func @transform_0(%arg0: i32, %arg1: i32) -> (i32, i32) {
    %c0_i32 = arith.constant 0 : i32
    %c0_i32_0 = arith.constant 0 : i32
    return %arg0, %c0_i32 : i32, i32
  }
  func.func @transform_1(%arg0: i32, %arg1: i32) -> (i32, i32) {
    %c0_i32 = arith.constant 0 : i32
    %c0_i32_0 = arith.constant 0 : i32
    return %c0_i32, %arg1 : i32, i32
  }
  func.func @transform_2(%arg0: i32, %arg1: i32) -> (i32, i32) {
    %c0_i32 = arith.constant 0 : i32
    %c0_i32_0 = arith.constant 0 : i32
    return %c0_i32, %arg1 : i32, i32
  }
  func.func @transform_3(%arg0: i32, %arg1: i32) -> (i32, i32) {
    %c1_i32 = arith.constant 1 : i32
    %0 = arith.subi %arg1, %c1_i32 : i32
    %c0_i32 = arith.constant 0 : i32
    %1 = arith.maxsi %0, %c0_i32 : i32
    %c0_i32_0 = arith.constant 0 : i32
    %c0_i32_1 = arith.constant 0 : i32
    return %1, %c0_i32_0 : i32, i32
  }
  func.func @transform_4(%arg0: i32, %arg1: i32) -> (i32, i32) {
    %c0_i32 = arith.constant 0 : i32
    %c0_i32_0 = arith.constant 0 : i32
    %c0_i32_1 = arith.constant 0 : i32
    return %c0_i32, %c0_i32_0 : i32, i32
  }
  func.func @transform_5(%arg0: i32, %arg1: i32) -> (i32, i32) {
    %c0_i32 = arith.constant 0 : i32
    %c0_i32_0 = arith.constant 0 : i32
    %c0_i32_1 = arith.constant 0 : i32
    return %c0_i32, %c0_i32_0 : i32, i32
  }
  func.func @transform_6(%arg0: i32, %arg1: i32) -> (i32, i32) {
    %c0_i32 = arith.constant 0 : i32
    %c0_i32_0 = arith.constant 0 : i32
    %c0_i32_1 = arith.constant 0 : i32
    return %c0_i32, %c0_i32_0 : i32, i32
  }
  func.func @transform_7(%arg0: i32, %arg1: i32) -> (i32, i32) {
    %c0_i32 = arith.constant 0 : i32
    %0 = arith.minsi %arg1, %c0_i32 : i32
    %c0_i32_0 = arith.constant 0 : i32
    return %arg0, %0 : i32, i32
  }
  func.func @transform_8(%arg0: i32, %arg1: i32) -> (i32, i32) {
    %c0_i32 = arith.constant 0 : i32
    %c0_i32_0 = arith.constant 0 : i32
    return %arg0, %c0_i32 : i32, i32
  }
}

</mosaic_0001>

<bundles_post_ra>
// kernel: tpu_custom_call.1
= control target key start
LH: loop header
LB: loop body
LE: loop exit
PB: predicated region body
PF: predicated region fallthrough
CT: control target
= control target key end

     0   :  { %14 = vsyncpa [#allocation5], 0  ;;  %s1758_s0 = inlined_call_operand.vmem [shape: bf16[24,32], index: 0, kind: input, shape index: {}]   ;;  %s1759_s1 = inlined_call_operand.vmem [shape: bf16[32,512], index: 1, kind: input, shape index: {}]   ;;  %s1760_s2 = inlined_call_operand.vmem [shape: f32[1,512], index: 2, kind: input, shape index: {}]   ;;  %s1761_s3 = inlined_call_operand.vmem [shape: bf16[256,32], index: 3, kind: input, shape index: {}]   ;;  %s1762_s4 = inlined_call_operand.vmem [shape: f32[1,32], index: 4, kind: input, shape index: {}]   ;;  %s1763_s5 = inlined_call_operand.vmem [shape: bf16[32,128], index: 5, kind: input, shape index: {}]   ;;  %s1764_s6 = inlined_call_operand.vmem [shape: f32[1,128], index: 6, kind: input, shape index: {}]   ;;  %s1765_s7 = inlined_call_operand.hbm [shape: f32[24,256], index: 7, kind: output, shape index: {0}]   ;;  %s1766_s8 = inlined_call_operand.hbm [shape: bf16[24,128], index: 8, kind: output, shape index: {1}]  }
   0x1   :  { %16 = vsyncpa [#allocation5 + $0x1], 0 }
   0x2   :  { %17 = vsyncpa [#allocation7], 0  ;;  %s1511_s27 = smov 0   ;;  %s1513_s28 = smov 0  }
   0x3   :  { %s1515_s29 = smov 0   ;;  %s1517_s30 = smov 0  }
   0x4   :  { %s1519_s9 = smov 0   ;;  %s1521_s10 = smov 0  }
   0x5   :  { %s1523_s11 = smov 0  }
   0x6 LB: > { %s1080_s12 = sadd.s32 4294967295, %s1456_s11   ;;  %s1081_s13 = sadd.s32 4294967294, %s1456_s11   ;;  %s1456_s11 = sphi %s1523_s11, %s23_s11   ;;  %s1452_s10 = sphi %s1521_s10, %s1776_s10   ;;  %s1448_s9 = sphi %s1519_s9, %s1775_s9   ;;  %s1444_s30 = sphi %s1517_s30, %s1774_s30   ;;  %s1440_s29 = sphi %s1515_s29, %s1773_s29   ;;  %s1436_s28 = sphi %s1513_s28, %s1742_s28   ;;  %s1432_s27 = sphi %s1511_s27, %s1772_s27  }
   0x7   : > { %s32_s14 = sadd.s32 1, %s1452_s10  ;;  %s68_s15 = sadd.s32 1, %s1444_s30 }
   0x8   : > { %p33_p0 = scmp.ge.s32.totalorder %s32_s14, 2  ;;  %p75_p1 = scmp.ne.s32.totalorder %s1444_s30, %s1440_s29 }
   0x9   : > { %p76_p2 = scmp.eq.s32.totalorder %s1456_s11, 0  ;;  %p1429_p5 = scmp.ne.s32.totalorder %s1436_s28, 0 }
   0xa   : > { %s1778_s14 = smov (%p33_p0, %s32_s14), 0  ;;  %p1561_p6 = scmp.eq.s32.totalorder %s1080_s12, 1 }
   0xb   : > { %p77_p3 = por %p76_p2, %p75_p1  ;;  %s65_s16 = ssub.s32 %s1452_s10, %s1778_s14 }
   0xc   : > { %p66_p4 = scmp.eq.s32.totalorder %s65_s16, 0  ;;  %p237_p7 = scmp.ne.s32.totalorder %s1436_s28, %s1432_s27 }
   0xd   : > { %p238_p8 = scmp.eq.s32.totalorder %s1081_s13, 1  ;;  %p1569_p9 = por %p1429_p5, %p1561_p6 }
   0xe   : > { %s1559_s17 = scalar_select %p66_p4, %s1444_s30, %s68_s15  }
   0xf   : > { %p1573_p10 = por %p238_p8, %p237_p7  ;;  %p1086_p11 = scmp.ge.s32.totalorder %s1456_s11, 2 }
  0x11   : > { %298 = sbr.rel (%p1086_p11) target bundleno = 31 (0x1f), region = 32 }
  0x18   : > { %301 = sbr.rel (!%p77_p3) target bundleno = 31 (0x1f), region = 36  ;;  %s303_s21 = sand.u32 (%p77_p3), 1, %s1444_s30  }
  0x19   : > { %s1142_s22 = sshll.u32 (%p77_p3), %s1452_s10, 3  ;;  %s1087_s23 = sshll.u32 (%p77_p3), %s303_s21, 5 }
  0x1a   : > { %s308_s26 = scalar_lea.vmem (%p77_p3), %s1759_s1, %s1142_s22  ;;  %s305_s12 = scalar_lea.vmem (%p77_p3), [#allocation3], %s1087_s23 }
  0x1b   : > { %v342_v0 = vld [vmem:[%s308_s26] sm:$0xff] (%p77_p3)  ;;  %v344_v1 = vld [vmem:[%s308_s26 + $0x10] sm:$0xff] (%p77_p3) }
  0x1c   : > { %v346_v2 = vld [vmem:[%s308_s26 + $0x20] sm:$0xff] (%p77_p3)  ;;  %343 = vst [vmem:[%s305_s12] sm:$0xff] (%p77_p3), %v342_v0  ;;  %345 = vst [vmem:[%s305_s12 + $0x8] sm:$0xff] (%p77_p3), %v344_v1  ;;  %v348_v3 = vld [vmem:[%s308_s26 + $0x30] sm:$0xff] (%p77_p3) }
  0x1d   : > { %347 = vst [vmem:[%s305_s12 + $0x10] sm:$0xff] (%p77_p3), %v346_v2  ;;  %349 = vst [vmem:[%s305_s12 + $0x18] sm:$0xff] (%p77_p3), %v348_v3 }
  0x1f PF: > { %p1090_p12 = scmp.ge.s32.totalorder %s1456_s11, 1  ;;  %p377_p13 = scmp.lt.s32.totalorder %s1456_s11, 3 }
  0x21   : > { %p378_p0 = pnand %p1090_p12, %p377_p13 }
  0x22   : > { %s384_s13 = sand.u32 (!%p378_p0), 1, %s1440_s29   ;;  %s1767_s15 = sand.u32 (!%p378_p0), 1, %s1436_s28   ;;  %v1458_v4 = vmov (!%p378_p0), 0   ;;  %v1303_v9 = vld [vmem:[%s1758_s0] sm:$0xff] (!%p378_p0)   ;;  %v1304_v10 = vld [vmem:[%s1758_s0 + $0x8] ss:$0 sps:$4 sm:$0xff] (!%p378_p0)   ;;  %v473_v11 = vlaneseq (!%p378_p0) }
  0x23   : > { %381 = sbr.rel (%p378_p0) target bundleno = 841 (0x349), region = 82  ;;  %s1091_s16 = sshll.u32 (!%p378_p0), %s384_s13, 5  ;;  %550 = vmatprep.mubr.bf16.mxu0 (!%p378_p0), %v1458_v4  ;;  %560 = vmatprep.mubr.bf16.mxu1 (!%p378_p0), %v1458_v4  ;;  %vm511_vm0 = vcmask (!%p378_p0), 261120  }
  0x24   : > { %s1591_s21 = smul.u32 (!%p378_p0), 48, %s1767_s15  ;;  %s1093_s22 = sadd.s32 (!%p378_p0), 4294967295, %s1448_s9  ;;  %v474_v12 = vshrl.u32 (!%p378_p0), %v473_v11, 7 }
  0x25   : > { %p447_p1 = scmp.gt.s32.totalorder (!%p378_p0), %s1093_s22, 0  ;;  %s386_s23 = scalar_lea.vmem (!%p378_p0), [#allocation3], %s1091_s16 }
  0x26   : > { %v1297_v5 = vld [vmem:[%s386_s23 + $0x4] ss:$8 sps:$4 sm:$0xff] (!%p378_p0)   ;;  %v1299_v6 = vld [vmem:[%s386_s23] ss:$8 sps:$4 sm:$0xff] (!%p378_p0)   ;;  %v1300_v7 = vld [vmem:[%s386_s23 + $0x14] ss:$8 sps:$4 sm:$0xff] (!%p378_p0)  }
  0x27   : > { %518 = vmatprep.subr.bf16.mxu0 (!%p378_p0), %v1297_v5  ;;  %1192 = vmatprep.subr.bf16.mxu1 (!%p378_p0), %v1297_v5  ;;  %v1302_v8 = vld [vmem:[%s386_s23 + $0x10] ss:$8 sps:$4 sm:$0xff] (!%p378_p0)   ;;  %s1092_s23 = sshll.u32 (!%p378_p0), %s1448_s9, 1  ;;  %v475_v13 = vsub.s32 (!%p378_p0), 0, %v474_v12  ;;  %v479_v15 = vsub.s32 (!%p378_p0), 1, %v474_v12  ;;  %s1618_s15 = scalar_lea.vmem (!%p378_p0), [#allocation4], %s1591_s21 }
  0x28   : > { %519 = vmatpush1.bf16.msra.mxu0 (!%p378_p0), %v1299_v6  ;;  %1194 = vmatpush1.bf16.msra.mxu1 (!%p378_p0), %v1299_v6  ;;  %p442_p3 = scmp.lt.s32.totalorder (!%p378_p0), %s1092_s23, 3  ;;  %p1104_p4 = scmp.ge.s32.totalorder (!%p378_p0), %s1448_s9, 1 }
  0x29   : > { %520 = vmatprep.subr.bf16.mxu0 (!%p378_p0), %v1300_v7  ;;  %1193 = vmatprep.subr.bf16.mxu1 (!%p378_p0), %v1300_v7 }
  0x2a   : > { %s1780_s22 = smov (!%p447_p1, %s1093_s22), 0  ;;  %s1784_s23 = smov (!%p442_p3, %s1092_s23), 3 }
  0x2b   : > { %s1094_s29 = sshll.u32 %s1780_s22, 5  ;;  %s444_s26 = scalar_lea.vmem %s1760_s2, %s1784_s23 }
  0x2c   : > { %p450_p2 = scmp.lt.s32.totalorder %s1094_s29, 31  ;;  %521 = vmatpush1.bf16.msra.mxu0 %v1302_v8  ;;  %1195 = vmatpush1.bf16.msra.mxu1 %v1302_v8  ;;  %v471_v14 = vld [vmem:[%s444_s26] sm:$0x3] }
  0x2d   : > { %v476_v16 = vrot.slane %v471_v14, %v475_v13  ;;  %v480_v17 = vrot.slane %v471_v14, %v479_v15 }
  0x2e   : > { %s1782_s29 = smov (!%p450_p2, %s1094_s29), 31 }
  0x2f   : > { %s1095_s13 = sshll.u32 %s1782_s29, 2  ;;  %1102 = vmatmul.mubr.msk.bf16.vlgmr.msra.gmra.mrb[0].mxu0 %vm511_vm0, %v1303_v9  ;;  %1103 = vmatmul.mubr.msk.bf16.vlgmr.msra.gmra.mrb[0].mxu1 %vm511_vm0, %v1304_v10 }
  0x30   : > { %s1603_s22 = scalar_lea.vmem %s1761_s3, %s1095_s13 }
 0x100   : > { %572 = sbr.rel (%p1104_p4) target bundleno = 265 (0x109), region = 90 }
 0x102   : > { %v552_v18 = vpop.f32.mrb[0].mxu0  ;;  %v562_v19 = vpop.f32.mrb[0].mxu1 }
 0x103   : > { %v1611_v20 = vadd.f32 %v552_v18, %v476_v16  ;;  %v1613_v21 = vadd.f32 %v562_v19, %v476_v16  ;;  %v554_v22 = vpop.f32.mrb[1].mxu0  ;;  %v564_v23 = vpop.f32.mrb[1].mxu1 }
 0x104   : > { %v555_v24 = vadd.f32 %v554_v22, %v480_v17  ;;  %v565_v25 = vadd.f32 %v564_v23, %v480_v17  ;;  %v556_v26 = vpop.f32.mrb[2].mxu0  ;;  %v566_v27 = vpop.f32.mrb[2].mxu1 }
 0x105   : > { %v1615_v28 = vadd.f32 %v556_v26, %v476_v16  ;;  %v558_v29 = vpop.f32.mrb[3].mxu0  ;;  %v567_v30 = vpop.f32.mrb[3].mxu1  ;;  %573 = vst [vmem:[%s1618_s15] sm:$0xff] (!%p1104_p4), %v1611_v20  ;;  %577 = vst [vmem:[%s1618_s15 + $0x20] sm:$0xff] (!%p1104_p4), %v1613_v21 }
 0x106   : > { %v559_v31 = vadd.f32 %v558_v29, %v480_v17  ;;  %574 = vst [vmem:[%s1618_s15 + $0x8] sm:$0xff] (!%p1104_p4), %v555_v24  ;;  %578 = vst [vmem:[%s1618_s15 + $0x28] sm:$0xff] (!%p1104_p4), %v565_v25 }
 0x107   : > { %575 = vst [vmem:[%s1618_s15 + $0x10] sm:$0xff] %v1615_v28 }
 0x108   : > { %576 = vst [vmem:[%s1618_s15 + $0x18] sm:$0xff] %v559_v31 }
 0x109 PF: > { %p1105_p5 = scmp.ne.s32.totalorder %s1448_s9, 1 }
 0x10a   : > { %v1459_v32 = vmov (!%p1105_p5), 0.0  }
 0x10b   : > { %582 = sbr.rel (%p1105_p5) target bundleno = 274 (0x112), region = 94  ;;  %583 = vst.msk [vmem:[#allocation2] sm:$0xff] (!%p1105_p5), %vm511_vm0, %v1459_v32  ;;  %584 = vst.msk [vmem:[#allocation2 + $0x8] sm:$0xff] (!%p1105_p5), %vm511_vm0, %v1459_v32 }
 0x10c   : > { %585 = vst.msk [vmem:[#allocation2 + $0x10] sm:$0xff] (!%p1105_p5), %vm511_vm0, %v1459_v32 }
 0x112 PF: > { %p1106_p7 = scmp.lt.s32.totalorder %s1448_s9, 1 }
 0x113   : > { %v1305_v33 = vld [vmem:[%s1603_s22 + $0x40] sm:$0xff] (!%p1106_p7)   ;;  %v591_v34 = vmax.f32 (!%p1106_p7), %v555_v24, 0.0  ;;  %v593_v36 = vmax.f32 (!%p1106_p7), %v559_v31, 0.0  ;;  %v1307_v37 = vld [vmem:[%s1603_s22 + $0x48] sm:$0xff] (!%p1106_p7)   ;;  %v595_v38 = vmax.f32 (!%p1106_p7), %v565_v25, 0.0  ;;  %v1309_v41 = vld [vmem:[%s1603_s22 + $0x50] sm:$0xff] (!%p1106_p7)  }
 0x114   : > { %589 = sbr.rel (%p1106_p7) target bundleno = 528 (0x210), region = 98  ;;  %v1306_v35 = vld [vmem:[%s1603_s22] sm:$0xff] (!%p1106_p7)   ;;  %1152 = vmatprep.subr.bf16.mxu0 (!%p1106_p7), %v1305_v33  ;;  %1196 = vmatprep.subr.bf16.mxu1 (!%p1106_p7), %v1305_v33  ;;  %v1308_v39 = vld [vmem:[%s1603_s22 + $0x8] sm:$0xff] (!%p1106_p7)   ;;  %v1310_v43 = vld [vmem:[%s1603_s22 + $0x10] sm:$0xff] (!%p1106_p7)   ;;  %v590_v53 = vmax.f32 (!%p1106_p7), %v1611_v20, 0.0  ;;  %v592_v54 = vmax.f32 (!%p1106_p7), %v1615_v28, 0.0 }
 0x115   : > { %1153 = vmatpush3.bf16.msra.mxu0 (!%p1106_p7), %v1306_v35  ;;  %1204 = vmatpush3.bf16.msra.mxu1 (!%p1106_p7), %v1306_v35  ;;  %v597_v40 = vpack.c.bf16 (!%p1106_p7), %v593_v36, %v591_v34  ;;  %v599_v42 = vpack.c.bf16 (!%p1106_p7), %v595_v38, %v595_v38  ;;  %v1311_v44 = vld [vmem:[%s1603_s22 + $0x58] sm:$0xff] (!%p1106_p7)   ;;  %v1313_v46 = vld [vmem:[%s1603_s22 + $0x60] sm:$0xff] (!%p1106_p7)   ;;  %v1315_v48 = vld [vmem:[%s1603_s22 + $0x68] sm:$0xff] (!%p1106_p7)   ;;  %v594_v55 = vmax.f32 (!%p1106_p7), %v1613_v21, 0.0 }
 0x116   : > { %1154 = vmatprep.subr.bf16.mxu0 (!%p1106_p7), %v1307_v37  ;;  %1197 = vmatprep.subr.bf16.mxu1 (!%p1106_p7), %v1307_v37  ;;  %v1312_v45 = vld [vmem:[%s1603_s22 + $0x18] sm:$0xff] (!%p1106_p7)   ;;  %v1314_v47 = vld [vmem:[%s1603_s22 + $0x20] sm:$0xff] (!%p1106_p7)   ;;  %v1316_v49 = vld [vmem:[%s1603_s22 + $0x28] sm:$0xff] (!%p1106_p7)   ;;  %v596_v57 = vpack.c.bf16 (!%p1106_p7), %v592_v54, %v590_v53 }
 0x117   : > { %763 = vmatprep.mubr.bf16.mxu0 (!%p1106_p7), %v597_v40  ;;  %771 = vmatprep.mubr.bf16.mxu1 (!%p1106_p7), %v599_v42  ;;  %v1317_v50 = vld [vmem:[%s1603_s22 + $0x70] sm:$0xff] (!%p1106_p7)   ;;  %v1319_v52 = vld [vmem:[%s1603_s22 + $0x78] sm:$0xff] (!%p1106_p7)   ;;  %v598_v58 = vpack.c.bf16 (!%p1106_p7), %v594_v55, %v594_v55  ;;  %v600_v61 = vld [vmem:[#allocation2] sm:$0xff] (!%p1106_p7) }
 0x118   : > { %v1318_v51 = vld [vmem:[%s1603_s22 + $0x30] sm:$0xff] (!%p1106_p7)   ;;  %v1320_v56 = vld [vmem:[%s1603_s22 + $0x38] sm:$0xff] (!%p1106_p7)   ;;  %v601_v5 = vld [vmem:[#allocation2 + $0x8] sm:$0xff] (!%p1106_p7) }
 0x119   : > { %1155 = vmatpush3.bf16.msra.mxu0 (!%p1106_p7), %v1308_v39  ;;  %1205 = vmatpush3.bf16.msra.mxu1 (!%p1106_p7), %v1308_v39  ;;  %v602_v63 = vld [vmem:[#allocation2 + $0x10] sm:$0xff] (!%p1106_p7) }
 0x11a   : > { %1156 = vmatprep.subr.bf16.mxu0 (!%p1106_p7), %v1309_v41  ;;  %1198 = vmatprep.subr.bf16.mxu1 (!%p1106_p7), %v1309_v41 }
 0x11d   : > { %1157 = vmatpush3.bf16.msra.mxu0 %v1310_v43  ;;  %1206 = vmatpush3.bf16.msra.mxu1 %v1310_v43 }
 0x11e   : > { %1158 = vmatprep.subr.bf16.mxu0 %v1311_v44  ;;  %1199 = vmatprep.subr.bf16.mxu1 %v1311_v44 }
 0x121   : > { %1159 = vmatpush3.bf16.msra.mxu0 %v1312_v45  ;;  %1207 = vmatpush3.bf16.msra.mxu1 %v1312_v45 }
 0x122   : > { %1160 = vmatprep.subr.bf16.mxu0 %v1313_v46  ;;  %1200 = vmatprep.subr.bf16.mxu1 %v1313_v46 }
 0x125   : > { %1161 = vmatpush3.bf16.msra.mxu0 %v1314_v47  ;;  %1208 = vmatpush3.bf16.msra.mxu1 %v1314_v47 }
 0x126   : > { %1162 = vmatprep.subr.bf16.mxu0 %v1315_v48  ;;  %1201 = vmatprep.subr.bf16.mxu1 %v1315_v48 }
 0x129   : > { %1163 = vmatpush3.bf16.msra.mxu0 %v1316_v49  ;;  %1209 = vmatpush3.bf16.msra.mxu1 %v1316_v49 }
 0x12a   : > { %1164 = vmatprep.subr.bf16.mxu0 %v1317_v50  ;;  %1202 = vmatprep.subr.bf16.mxu1 %v1317_v50 }
 0x12d   : > { %1165 = vmatpush3.bf16.msra.mxu0 %v1318_v51  ;;  %1210 = vmatpush3.bf16.msra.mxu1 %v1318_v51 }
 0x12e   : > { %1166 = vmatprep.subr.bf16.mxu0 %v1319_v52  ;;  %1203 = vmatprep.subr.bf16.mxu1 %v1319_v52 }
 0x131   : > { %1167 = vmatpush3.bf16.msra.mxu0 %v1320_v56  ;;  %1211 = vmatpush3.bf16.msra.mxu1 %v1320_v56 }
 0x134   : > { %764 = vmatmul.mubr.bf16.vlgmr.msra.gmra.mrb[0].mxu0 %v596_v57  ;;  %772 = vmatmul.mubr.bf16.vlgmr.msra.gmra.mrb[0].mxu1 %v598_v58 }
 0x207   : > { %v1168_v59 = vpop.f32.mrb[0].mxu0  ;;  %v1174_v60 = vpop.f32.mrb[0].mxu1 }
 0x208   : > { %v1169_v62 = vpop.f32.mrb[1].mxu0  ;;  %v1175_v0 = vpop.f32.mrb[1].mxu1 }
 0x209   : > { %v1170_v1 = vadd.f32 %v1169_v62, %v1168_v59  ;;  %v1176_v2 = vadd.f32 %v1175_v0, %v1174_v60  ;;  %v1171_v3 = vpop.f32.mrb[2].mxu0  ;;  %v1177_v4 = vpop.f32.mrb[2].mxu1 }
 0x20a   : > { %v1172_v6 = vpop.f32.mrb[3].mxu0  ;;  %v1178_v7 = vpop.f32.mrb[3].mxu1 }
 0x20b   : > { %v779_v8 = vadd.f32 %v1170_v1, %v600_v61  ;;  %v781_v9 = vadd.f32 %v1176_v2, %v602_v63  ;;  %v1173_v10 = vadd.f32 %v1172_v6, %v1171_v3 }
 0x20d   : > { %782 = vst.msk [vmem:[#allocation2] sm:$0xff] %vm511_vm0, %v779_v8  ;;  %784 = vst.msk [vmem:[#allocation2 + $0x10] sm:$0xff] %vm511_vm0, %v781_v9  ;;  %v780_v11 = vadd.f32 %v1173_v10, %v601_v5 }
 0x20f   : > { %783 = vst.msk [vmem:[#allocation2 + $0x8] sm:$0xff] %vm511_vm0, %v780_v11 }
 0x210 PF: > { %787 = sbr.rel (%p1105_p5) target bundleno = 788 (0x314), region = 102  ;;  %v1321_v12 = vld [vmem:[%s1763_s5] sm:$0xff] (!%p1105_p5)   ;;  %v1322_v13 = vld [vmem:[%s1763_s5 + $0x8] sm:$0xff] (!%p1105_p5)  }
 0x211   : > { %1184 = vmatprep.subr.bf16.mxu0 (!%p1105_p5), %v1321_v12  ;;  %v1124_v16 = vld [vmem:[%s1762_s4] ss:$0 sm:$0xff] (!%p1105_p5) }
 0x212   : > { %1185 = vmatpush3.bf16.msra.mxu0 (!%p1105_p5), %v1321_v12  ;;  %v1125_v26 = vld [vmem:[%s1764_s6] ss:$0 sm:$0xff] (!%p1105_p5) }
 0x213   : > { %1186 = vmatprep.subr.bf16.mxu0 (!%p1105_p5), %v1322_v13 }
 0x214   : > { %v788_v14 = vld [vmem:[#allocation2] sm:$0xff] (!%p1105_p5)  ;;  %v790_v19 = vld [vmem:[#allocation2 + $0x10] sm:$0xff] (!%p1105_p5) }
 0x215   : > { %v798_v17 = vadd.f32 (!%p1105_p5), %v1124_v16, %v788_v14  ;;  %v800_v20 = vadd.f32 (!%p1105_p5), %v1124_v16, %v790_v19 }
 0x216   : > { %v789_v15 = vld [vmem:[#allocation2 + $0x8] sm:$0xff] (!%p1105_p5)  ;;  %1187 = vmatpush3.bf16.msra.mxu0 (!%p1105_p5), %v1322_v13 }
 0x217   : > { %v799_v18 = vadd.f32 %v1124_v16, %v789_v15  ;;  %v801_v21 = vmax.f32 %v798_v17, 0.0  ;;  %v803_v23 = vmax.f32 %v800_v20, 0.0 }
 0x219   : > { %v802_v22 = vmax.f32 %v799_v18, 0.0  ;;  %v805_v25 = vpack.c.bf16 %v803_v23, %v803_v23 }
 0x21b   : > { %v804_v24 = vpack.c.bf16 %v802_v22, %v801_v21 }
 0x21d   : > { %1188 = vmatprep.mubr.msk.bf16.mxu0 %vm511_vm0, %v804_v24 }
 0x21e   : > { %1189 = vmatmul.mubr.msk.bf16.vlgmr.msra.gmra.mrb[0].mxu0 %vm511_vm0, %v805_v25 }
 0x2f1   : > { %v1190_v27 = vpop.f32.mrb[0].mxu0 }
 0x2f2   : > { %v878_v28 = vadd.f32 %v1190_v27, %v1125_v26  ;;  %v869_v29 = vpop.f32.mrb[1].mxu0 }
 0x2f3   : > { %v870_v30 = vadd.f32 %v1125_v26, %v869_v29  ;;  %v1191_v31 = vpop.f32.mrb[2].mxu0 }
 0x2f4   : > { %v1132_v32 = vmul.f32 -1.442695, %v878_v28  ;;  %v872_v33 = vpop.f32.mrb[3].mxu0 }
 0x2f5   : > { %v1130_v34 = vmul.f32 -1.442695, %v870_v30  ;;  %v873_v35 = vadd.f32 %v1125_v26, %v872_v33 }
 0x2f6   : > { %1323 = vpow2.f32 %v1132_v32 }
 0x2f7   : > { %1325 = vpow2.f32 %v1130_v34  ;;  %v1131_v36 = vmul.f32 -1.442695, %v873_v35 }
 0x2f9   : > { %1327 = vpow2.f32 %v1131_v36 }
 0x300   : > { %v1324_v37 = vpop.eup %1323 }
 0x301   : > { %v1326_v38 = vpop.eup %1325  ;;  %v894_v39 = vadd.f32 1.0, %v1324_v37 }
 0x302   : > { %v892_v40 = vadd.f32 1.0, %v1326_v38 }
 0x303   : > { %v1328_v41 = vpop.eup %1327  ;;  %1329 = vrcp.f32 %v894_v39 }
 0x304   : > { %v893_v42 = vadd.f32 1.0, %v1328_v41  ;;  %1331 = vrcp.f32 %v892_v40 }
 0x306   : > { %1333 = vrcp.f32 %v893_v42 }
 0x30d   : > { %v1330_v43 = vpop.eup %1329 }
 0x30e   : > { %v1145_v44 = vpack.c.bf16 %v1330_v43, %v1330_v43  ;;  %v1332_v45 = vpop.eup %1331 }
 0x310   : > { %v1334_v46 = vpop.eup %1333  ;;  %916 = vst [vmem:[#allocation6 + $0x8] sm:$0xf] %v1145_v44 }
 0x311   : > { %v1150_v47 = vpack.c.bf16 %v1334_v46, %v1332_v45 }
 0x313   : > { %1151 = vst [vmem:[#allocation6] sm:$0xff] %v1150_v47  }
 0x314 PF: > { %p925_p8 = scmp.lt.s32.totalorder %s1448_s9, 0  ;;  %s936_s25 = sshll.u32 %s1618_s15, 4  ;;  %s1678_s25 = int_to_ptr.vmem [resolvable:$true] %s936_s25 }
 0x315   : > { %s1771_s13 = sand.u32 1, %s1436_s28   ;;  %s1335_s22 = scalar_lea.vmem %s1678_s25, 768 }
 0x316   : > { %s1786_s9 = smov (!%p925_p8, %s1448_s9), 0  ;;  %s1687_s16 = scalar_lea.sflag [#allocation5], %s1771_s13 }
 0x317   : > { %s1146_s26 = sshll.u32 %s1786_s9, 8  ;;  %p1336_p12 = scmp.ne.s32.totalorder %s1678_s25, %s1335_s22 }
 0x318   : > { %s1683_s12 = scalar_lea.hbm %s1765_s7, %s1146_s26  ;;  %s1460_s15 = smov [#allocation4]  }
 0x319   : > { %p1337_p13 = pnand %p1336_p12, %p1569_p9  ;;  %s1339_s23 = sshll.u32 %s1460_s15, 4  ;;  %s1340_s23 = int_to_ptr.vmem [resolvable:$false] %s1339_s23 }
 0x31a   : > { %s1341_s24 = scalar_lea.vmem %s1340_s23, 1536  ;;  %p1342_p1 = scmp.lt.s32.totalorder %s1678_s25, %s1340_s23 }
 0x31b   : > { %p1338_p0 = pneg %p1337_p13  ;;  %p1343_p2 = scmp.lt.s32.totalorder %s1341_s24, %s1335_s22 }
 0x31d   : > { %p1344_p3 = por %p1343_p2, %p1342_p1 }
 0x31f   : > { %p1345_p4 = pnand %p1344_p3, %p1338_p0 }
 0x321   : > { %1348 = shalt.err (!%p1345_p4)
}
 0x322   : > { %s1349_s9 = scalar_lea.hbm %s1683_s12, 768  ;;  %s1353_s29 = scalar_lea.hbm %s1765_s7, 768 }
 0x323   : > { %p1350_p5 = scmp.ne.s32.totalorder %s1683_s12, %s1349_s9  ;;  %p1354_p12 = scmp.lt.u32.totalorder %s1683_s12, %s1765_s7 }
 0x324   : > { %p1355_p13 = scmp.lt.u32.totalorder %s1353_s29, %s1349_s9  ;;  %p1357_p1 = scmp.lt.u32.totalorder %s1349_s9, %s1683_s12 }
 0x325   : > { %p1351_p7 = pnand %p1350_p5, %p1569_p9 }
 0x326   : > { %p1356_p0 = por %p1355_p13, %p1354_p12 }
 0x327   : > { %p1352_p8 = pneg %p1351_p7 }
 0x328   : > { %p1358_p2 = por %p1357_p1, %p1356_p0 }
 0x32a   : > { %p1359_p3 = pnand %p1358_p2, %p1352_p8 }
 0x32c   : > { %1362 = shalt.err (!%p1359_p3)
}
 0x32d   : > { %s1461_s22 = smov 256   ;;  %s1462_s23 = smov 16  }
 0x32e   : > { %1213 = dma.vmem_to_hbm [thread:$0]  (%p1569_p9), %s1678_s25, 768, %s1683_s12, %s1687_s16, %s1461_s22, %s1461_s22, %s1462_s23  }
 0x32f   : > { %s1463_s24 = smov [#allocation6]  }
 0x330   : > { %s952_s26 = sshll.u32 %s1463_s24, 4  ;;  %s953_s26 = int_to_ptr.vmem [resolvable:$true] %s952_s26 }
 0x331   : > { %s1363_s21 = scalar_lea.vmem %s953_s26, 192  ;;  %p1370_p12 = scmp.lt.s32.totalorder %s953_s26, %s953_s26 }
 0x332   : > { %p1364_p4 = scmp.ne.s32.totalorder %s953_s26, %s1363_s21  ;;  %p1371_p8 = scmp.lt.s32.totalorder %s1363_s21, %s1363_s21 }
 0x334   : > { %p1365_p5 = pnand %p1364_p4, %p1561_p6  ;;  %p1372_p13 = por %p1371_p8, %p1370_p12 }
 0x336   : > { %p1366_p7 = pneg %p1365_p5 }
 0x338   : > { %p1373_p0 = pnand %p1372_p13, %p1366_p7 }
 0x33a   : > { %1376 = shalt.err (!%p1373_p0)
}
 0x33b   : > { %s1377_s13 = scalar_lea.hbm %s1766_s8, 192 }
 0x33c   : > { %p1378_p9 = scmp.ne.s32.totalorder %s1766_s8, %s1377_s13  ;;  %p1383_p3 = scmp.lt.u32.totalorder %s1377_s13, %s1766_s8 }
 0x33e   : > { %p1379_p1 = pnand %p1378_p9, %p1561_p6 }
 0x340   : > { %p1380_p2 = pneg %p1379_p1 }
 0x342   : > { %p1385_p4 = pnand %p1383_p3, %p1380_p2 }
 0x344   : > { %1388 = shalt.err (!%p1385_p4)
}
 0x345   : > { %s1464_s15 = smov 64   ;;  %s1465_s22 = smov 4  }
 0x346   : > { %1215 = dma.vmem_to_hbm [thread:$0]  (%p1561_p6), %s953_s26, 192, %s1766_s8, [#allocation7], %s1464_s15, %s1464_s15, %s1465_s22  }
 0x347   : > { %1422 = dma.done.wait (%p1561_p6), [#allocation7], 192  }
 0x348   : > { %1424 = vsyncadd (%p1561_p6), [#allocation7], 4294967104 }
 0x349 PF: > { %s971_s21 = sand.u32 1, %s1432_s27   ;;  %p1220_p5 = pnand %p1086_p11, %p1573_p10 }
 0x34a   : > { %s972_s9 = scalar_lea.sflag [#allocation5], %s971_s21 }
 0x34b   : > { %1426 = dma.done.wait (!%p1220_p5), %s972_s9, 768  }
 0x34c   : > { %1428 = vsyncadd (!%p1220_p5), %s972_s9, 4294966528  ;;  %s23_s11 = sadd.s32 1, %s1456_s11   ;;  %s1772_s27 = smov %s1436_s28 }
 0x34d   : > { %p20_p7 = scmp.ge.s32.totalorder %s23_s11, 4   ;;  %s1742_s28 = smov 0  }
 0x34e   : > { %s1773_s29 = smov %s1444_s30  ;;  %s1774_s30 = smov %s1559_s17 }
 0x34f   : > { %s1775_s9 = smov %s1452_s10  ;;  %s1776_s10 = smov %s1778_s14 }
 0x350   :  { %22 = sbr.rel (!%p20_p7) target bundleno = 6 (0x6), region = 160 }
 0x357   :  { %977 = vsyncpa [#allocation5], 1 }
 0x358   :  { %979 = vsyncpa [#allocation5 + $0x1], 1 }
 0x359   :  { %980 = vsyncpa [#allocation7], 1 }

</bundles_post_ra>
